<compile_context>
chip_gen: v7x
topology: tpu7x:2x2x1
jax: 0.10.0
libtpu: 0.0.40
codegen_flags: <defaults>
</compile_context>

<pallas_src>
import functools

import jax
import jax.numpy as jnp
from jax.experimental import pallas as pl
from jax.experimental.pallas import tpu as pltpu

LANE = 128


def _round_up(x, m):
    return (x + m - 1) // m * m


def _pad_last(a, target):
    pad = target - a.shape[-1]
    if pad == 0:
        return a
    return jnp.pad(a, [(0, 0)] * (a.ndim - 1) + [(0, pad)])


# -----------------------------------------------------------------------------
# Pallas kernel: ARTR prediction heads
# -----------------------------------------------------------------------------
def artr_head_kernel(x_ref,
                     wc_ref, bc_ref,          # class_embed (padded to 128 cols)
                     w1_ref, b1_ref,          # bbox_embed.layers[0]
                     w2_ref, b2_ref,          # bbox_embed.layers[1]
                     w3_ref, b3_ref,          # bbox_embed.layers[2] (padded)
                     logits_ref, boxes_ref):
    x = x_ref[...]                                            # (TM, D) bf16/f32

    # ---- class head: Linear(D, 92) padded to 128 lanes ----
    logits = jnp.dot(x, wc_ref[...], preferred_element_type=jnp.float32)
    logits_ref[...] = logits + bc_ref[...]                    # (TM, 128) f32

    # ---- bbox head: 3-layer MLP, ReLU on hidden layers, sigmoid at the end ----
    h = jnp.dot(x, w1_ref[...], preferred_element_type=jnp.float32) + b1_ref[...]
    h = jnp.maximum(h, 0.0).astype(x.dtype)                   # back to matmul dtype
    h = jnp.dot(h, w2_ref[...], preferred_element_type=jnp.float32) + b2_ref[...]
    h = jnp.maximum(h, 0.0).astype(x.dtype)
    b = jnp.dot(h, w3_ref[...], preferred_element_type=jnp.float32) + b3_ref[...]
    boxes_ref[...] = jax.nn.sigmoid(b)                        # (TM, 128) f32


def artr_heads(out, params, *, tm=512, use_bf16=True):
    """out: [B, Q, D] f32  ->  (pred_logits [B, Q, 92], pred_boxes [B, Q, 4])."""
    B, Q, D = out.shape
    M = B * Q

    # Row tile: large by default for MXU utilization, clamped for tiny problems.
    tm = min(tm, _round_up(M, 8))
    M_pad = _round_up(M, tm)

    mm_dtype = jnp.bfloat16 if use_bf16 else jnp.float32

    x = out.reshape(M, D)
    if M_pad != M:
        x = jnp.pad(x, ((0, M_pad - M), (0, 0)))
    x = x.astype(mm_dtype)

    n_cls = params["class_w"].shape[1]
    n_box = params["mlp_w3"].shape[1]
    nc_pad = _round_up(n_cls, LANE)      # 92  -> 128 (lane-dense stores)
    nb_pad = _round_up(n_box, LANE)      # 4   -> 128

    # Weights in matmul dtype, biases kept f32.  Narrow heads zero-padded to 128.
    wc = _pad_last(params["class_w"], nc_pad).astype(mm_dtype)
    bc = _pad_last(params["class_b"], nc_pad).astype(jnp.float32)
    w1 = params["mlp_w1"].astype(mm_dtype)
    b1 = params["mlp_b1"].astype(jnp.float32)
    w2 = params["mlp_w2"].astype(mm_dtype)
    b2 = params["mlp_b2"].astype(jnp.float32)
    w3 = _pad_last(params["mlp_w3"], nb_pad).astype(mm_dtype)
    b3 = _pad_last(params["mlp_b3"], nb_pad).astype(jnp.float32)

    full = lambda shape: pl.BlockSpec(shape, lambda i: (0, 0))   # resident weight
    rows = lambda shape: pl.BlockSpec(shape, lambda i: (i, 0))   # row-tiled

    # VMEM budget: double-buffered x tile + two 128-wide f32 output tiles +
    # (double-buffered) weights/biases, plus slack.  Explicit so big tm does
    # not trip v5e's 16 MiB scoped default; capped below v7x's 64 MiB VMEM.
    itm = jnp.dtype(mm_dtype).itemsize
    x_tile_b = tm * D * itm
    out_tile_b = tm * (nc_pad + nb_pad) * 4
    w_b = (D * nc_pad + 2 * D * D + D * nb_pad) * itm
    bias_b = (nc_pad + 2 * D + nb_pad) * 4
    vmem_limit = int(min(max(2 * (x_tile_b + out_tile_b + w_b + bias_b) + (4 << 20),
                             32 << 20),
                         60 << 20))

    cost = pl.CostEstimate(
        flops=int(2 * M_pad * D * (2 * D + nc_pad + nb_pad)),
        transcendentals=int(M_pad * nb_pad),                    # sigmoid exps
        bytes_accessed=int(M_pad * D * itm + w_b + bias_b
                           + M_pad * (nc_pad + nb_pad) * 4),
    )

    logits_pad, boxes_pad = pl.pallas_call(
        artr_head_kernel,
        out_shape=(
            jax.ShapeDtypeStruct((M_pad, nc_pad), jnp.float32),
            jax.ShapeDtypeStruct((M_pad, nb_pad), jnp.float32),
        ),
        grid_spec=pltpu.PrefetchScalarGridSpec(
            num_scalar_prefetch=0,
            grid=(M_pad // tm,),
            in_specs=[
                rows((tm, D)),
                full((D, nc_pad)), full((1, nc_pad)),
                full((D, D)),      full((1, D)),
                full((D, D)),      full((1, D)),
                full((D, nb_pad)), full((1, nb_pad)),
            ],
            out_specs=[
                rows((tm, nc_pad)),
                rows((tm, nb_pad)),
            ],
        ),
        compiler_params=pltpu.CompilerParams(
            dimension_semantics=("parallel",),
            vmem_limit_bytes=vmem_limit),
        cost_estimate=cost,
    )(x, wc, bc, w1, b1, w2, b2, w3, b3)

    pred_logits = logits_pad[:M, :n_cls].reshape(B, Q, n_cls)
    pred_boxes = boxes_pad[:M, :n_box].reshape(B, Q, n_box)
    return pred_logits, pred_boxes


# -----------------------------------------------------------------------------
# Deterministic parameter init (shapes from ARTR.__init__ / MLP.__init__)
# -----------------------------------------------------------------------------
def init_params(key, d_model, n_queries, n_classes=92):
    ks = jax.random.split(key, 8)
    s = 1.0 / jnp.sqrt(d_model)
    return {
        # class_embed = nn.Linear(d_model, 92)
        "class_w": jax.random.uniform(ks[0], (d_model, n_classes), jnp.float32, -s, s),
        "class_b": jax.random.uniform(ks[1], (1, n_classes), jnp.float32, -s, s),
        # bbox_embed = MLP(d_model, d_model, 4, 3)
        "mlp_w1": jax.random.uniform(ks[2], (d_model, d_model), jnp.float32, -s, s),
        "mlp_b1": jax.random.uniform(ks[3], (1, d_model), jnp.float32, -s, s),
        "mlp_w2": jax.random.uniform(ks[4], (d_model, d_model), jnp.float32, -s, s),
        "mlp_b2": jax.random.uniform(ks[5], (1, d_model), jnp.float32, -s, s),
        "mlp_w3": jax.random.uniform(ks[6], (d_model, 4), jnp.float32, -s, s),
        "mlp_b3": jax.random.uniform(ks[7], (1, 4), jnp.float32, -s, s),
        # self.query_embed = nn.Parameter(Tensor(n_queries, d_model)); normal_()
        "query_embed": jax.random.normal(jax.random.fold_in(key, 99),
                                         (n_queries, d_model), jnp.float32),
    }


# -----------------------------------------------------------------------------
# Plain-JAX stand-in for the injected backbone_process / transformer_process.
# TODO(synk): backbone_process and transformer_process are external modules
# injected via __init__ (not defined in artr.py); this stub only reproduces the
# data flow (query_embed repeated over batch + target features -> out[B,Q,D]).
# -----------------------------------------------------------------------------
def stub_backbone_transformer(t_features, query_embed, mix_w):
    # t_features: [B, D, H, W]  (NCHW, as the PyTorch backbone would emit)
    B = t_features.shape[0]
    pooled = jnp.mean(t_features, axis=(2, 3))                          # [B, D]
    q = jnp.broadcast_to(query_embed[None], (B,) + query_embed.shape)   # repeat
    out = jnp.tanh(q @ mix_w + pooled[:, None, :])                      # [B, Q, D]
    return out


# -----------------------------------------------------------------------------
# Pure-JAX references for the heads (to validate the kernel)
# -----------------------------------------------------------------------------
def heads_ref_matched(out, p, *, use_bf16=True):
    """Reference with the same bf16 matmul-input casts as the kernel."""
    dt = jnp.bfloat16 if use_bf16 else jnp.float32
    B, Q, D = out.shape
    x = out.reshape(-1, D).astype(dt)

    def mm(a, w):
        return jnp.dot(a.astype(dt), w.astype(dt),
                       preferred_element_type=jnp.float32)

    logits = mm(x, p["class_w"]) + p["class_b"][0]
    h = jnp.maximum(mm(x, p["mlp_w1"]) + p["mlp_b1"][0], 0.0)
    h = jnp.maximum(mm(h, p["mlp_w2"]) + p["mlp_b2"][0], 0.0)
    boxes = jax.nn.sigmoid(mm(h, p["mlp_w3"]) + p["mlp_b3"][0])
    return logits.reshape(B, Q, -1), boxes.reshape(B, Q, -1)


def heads_ref_f32(out, p):
    """Full-f32 semantic reference (matches the PyTorch module exactly)."""
    logits = out @ p["class_w"] + p["class_b"][0]
    h = jax.nn.relu(out @ p["mlp_w1"] + p["mlp_b1"][0])
    h = jax.nn.relu(h @ p["mlp_w2"] + p["mlp_b2"][0])
    boxes = jax.nn.sigmoid(h @ p["mlp_w3"] + p["mlp_b3"][0])
    return logits, boxes


if __name__ == "__main__":
    B, D, H, W = 2, 32, 16, 16      # batch, d_model, spatial
    Q = 8                           # n_queries

    key = jax.random.PRNGKey(0)
    k_feat, k_mix, k_param = jax.random.split(key, 3)

    # "backbone" target features, NCHW like the PyTorch side.
    t_features = jax.random.normal(k_feat, (B, D, H, W), jnp.float32)
    mix_w = jax.random.normal(k_mix, (D, D), jnp.float32) * 0.1

    params = init_params(k_param, d_model=D, n_queries=Q)

    # Stubbed backbone + transformer -> decoder output [B, Q, D]
    out = stub_backbone_transformer(t_features, params["query_embed"], mix_w)

    # ARTR heads in Pallas (bf16 matmul inputs, f32 accumulation)
    pred_logits, pred_boxes = jax.jit(
        functools.partial(artr_heads, tm=512, use_bf16=True))(out, params)
    jax.block_until_ready((pred_logits, pred_boxes))

    assert pred_logits.shape == (B, Q, 92)
    assert pred_boxes.shape == (B, Q, 4)

    # Validate against the cast-matched reference (tight tolerance).
    ref_logits, ref_boxes = heads_ref_matched(out, params, use_bf16=True)
    assert jnp.allclose(pred_logits, ref_logits, atol=2e-3, rtol=2e-3)
    assert jnp.allclose(pred_boxes, ref_boxes, atol=2e-3, rtol=2e-3)

    # Sanity check against the full-f32 module semantics (loose tolerance,
    # bounds the bf16 matmul-input error).
    f32_logits, f32_boxes = heads_ref_f32(out, params)
    assert jnp.allclose(pred_logits, f32_logits, atol=1e-1)
    assert jnp.allclose(pred_boxes, f32_boxes, atol=1e-1)

    print("KERNEL_OK")
</pallas_src>

<mosaic_0001>
module attributes {stable_mosaic.version = 11 : i64} {
  func.func @artr_head_kernel(%arg0: i32, %arg1: memref<16x32xbf16, #tpu.memory_space<vmem>>, %arg2: memref<32x128xbf16, #tpu.memory_space<vmem>>, %arg3: memref<1x128xf32, #tpu.memory_space<vmem>>, %arg4: memref<32x32xbf16, #tpu.memory_space<vmem>>, %arg5: memref<1x32xf32, #tpu.memory_space<vmem>>, %arg6: memref<32x32xbf16, #tpu.memory_space<vmem>>, %arg7: memref<1x32xf32, #tpu.memory_space<vmem>>, %arg8: memref<32x128xbf16, #tpu.memory_space<vmem>>, %arg9: memref<1x128xf32, #tpu.memory_space<vmem>>, %arg10: memref<16x128xf32, #tpu.memory_space<vmem>>, %arg11: memref<16x128xf32, #tpu.memory_space<vmem>>) attributes {dimension_semantics = [#tpu.dimension_semantics<parallel>], iteration_bounds = array<i64: 1>, scalar_prefetch = 0 : i64, scratch_operands = 0 : i64, tpu.core_type = #tpu.core_type<tc>, window_params = [{transform_indices = @transform_0, window_bounds = array<i64: 16, 32>}, {pipeline_mode = #tpu.pipeline_mode<synchronous>, transform_indices = @transform_1, window_bounds = array<i64: 32, 128>}, {pipeline_mode = #tpu.pipeline_mode<synchronous>, transform_indices = @transform_2, window_bounds = array<i64: 1, 128>}, {pipeline_mode = #tpu.pipeline_mode<synchronous>, transform_indices = @transform_3, window_bounds = array<i64: 32, 32>}, {pipeline_mode = #tpu.pipeline_mode<synchronous>, transform_indices = @transform_4, window_bounds = array<i64: 1, 32>}, {pipeline_mode = #tpu.pipeline_mode<synchronous>, transform_indices = @transform_5, window_bounds = array<i64: 32, 32>}, {pipeline_mode = #tpu.pipeline_mode<synchronous>, transform_indices = @transform_6, window_bounds = array<i64: 1, 32>}, {pipeline_mode = #tpu.pipeline_mode<synchronous>, transform_indices = @transform_7, window_bounds = array<i64: 32, 128>}, {pipeline_mode = #tpu.pipeline_mode<synchronous>, transform_indices = @transform_8, window_bounds = array<i64: 1, 128>}, {transform_indices = @transform_9, window_bounds = array<i64: 16, 128>}, {transform_indices = @transform_10, window_bounds = array<i64: 16, 128>}]} {
    %c0 = arith.constant 0 : index
    %c0_0 = arith.constant 0 : index
    %0 = vector.load %arg1[%c0, %c0_0] : memref<16x32xbf16, #tpu.memory_space<vmem>>, vector<16x32xbf16>
    %c0_1 = arith.constant 0 : index
    %c0_2 = arith.constant 0 : index
    %1 = vector.load %arg2[%c0_1, %c0_2] : memref<32x128xbf16, #tpu.memory_space<vmem>>, vector<32x128xbf16>
    %cst = arith.constant dense<0.000000e+00> : vector<16x128xf32>
    %2 = tpu.matmul %0, %1, %cst {dimension_numbers = #tpu.dot_dimension_numbers<[1], [0], [0], [1], [0, 0, 1, 1], [], []>} : vector<16x32xbf16>, vector<32x128xbf16>, vector<16x128xf32> -> vector<16x128xf32>
    %c0_3 = arith.constant 0 : index
    %c0_4 = arith.constant 0 : index
    %3 = vector.load %arg3[%c0_3, %c0_4] : memref<1x128xf32, #tpu.memory_space<vmem>>, vector<1x128xf32>
    %4 = vector.broadcast %3 : vector<1x128xf32> to vector<16x128xf32>
    %5 = arith.addf %2, %4 : vector<16x128xf32>
    %c0_5 = arith.constant 0 : index
    %c0_6 = arith.constant 0 : index
    %6 = vector.load %arg10[%c0_5, %c0_6] : memref<16x128xf32, #tpu.memory_space<vmem>>, vector<16x128xf32>
    tpu.vector_store %arg10[%c0_5, %c0_6], %5 {strides = array<i32>} : memref<16x128xf32, #tpu.memory_space<vmem>>, vector<16x128xf32>,
    %c0_7 = arith.constant 0 : index
    %c0_8 = arith.constant 0 : index
    %7 = vector.load %arg4[%c0_7, %c0_8] : memref<32x32xbf16, #tpu.memory_space<vmem>>, vector<32x32xbf16>
    %cst_9 = arith.constant dense<0.000000e+00> : vector<16x32xf32>
    %8 = tpu.matmul %0, %7, %cst_9 {dimension_numbers = #tpu.dot_dimension_numbers<[1], [0], [0], [1], [0, 0, 1, 1], [], []>} : vector<16x32xbf16>, vector<32x32xbf16>, vector<16x32xf32> -> vector<16x32xf32>
    %c0_10 = arith.constant 0 : index
    %c0_11 = arith.constant 0 : index
    %9 = vector.load %arg5[%c0_10, %c0_11] : memref<1x32xf32, #tpu.memory_space<vmem>>, vector<1x32xf32>
    %10 = vector.broadcast %9 : vector<1x32xf32> to vector<16x32xf32>
    %11 = arith.addf %8, %10 : vector<16x32xf32>
    %cst_12 = arith.constant 0.000000e+00 : f32
    %12 = vector.broadcast %cst_12 : f32 to vector<16x32xf32>
    %13 = arith.maximumf %11, %12 : vector<16x32xf32>
    %14 = arith.truncf %13 : vector<16x32xf32> to vector<16x32xbf16>
    %c0_13 = arith.constant 0 : index
    %c0_14 = arith.constant 0 : index
    %15 = vector.load %arg6[%c0_13, %c0_14] : memref<32x32xbf16, #tpu.memory_space<vmem>>, vector<32x32xbf16>
    %cst_15 = arith.constant dense<0.000000e+00> : vector<16x32xf32>
    %16 = tpu.matmul %14, %15, %cst_15 {dimension_numbers = #tpu.dot_dimension_numbers<[1], [0], [0], [1], [0, 0, 1, 1], [], []>} : vector<16x32xbf16>, vector<32x32xbf16>, vector<16x32xf32> -> vector<16x32xf32>
    %c0_16 = arith.constant 0 : index
    %c0_17 = arith.constant 0 : index
    %17 = vector.load %arg7[%c0_16, %c0_17] : memref<1x32xf32, #tpu.memory_space<vmem>>, vector<1x32xf32>
    %18 = vector.broadcast %17 : vector<1x32xf32> to vector<16x32xf32>
    %19 = arith.addf %16, %18 : vector<16x32xf32>
    %cst_18 = arith.constant 0.000000e+00 : f32
    %20 = vector.broadcast %cst_18 : f32 to vector<16x32xf32>
    %21 = arith.maximumf %19, %20 : vector<16x32xf32>
    %22 = arith.truncf %21 : vector<16x32xf32> to vector<16x32xbf16>
    %c0_19 = arith.constant 0 : index
    %c0_20 = arith.constant 0 : index
    %23 = vector.load %arg8[%c0_19, %c0_20] : memref<32x128xbf16, #tpu.memory_space<vmem>>, vector<32x128xbf16>
    %cst_21 = arith.constant dense<0.000000e+00> : vector<16x128xf32>
    %24 = tpu.matmul %22, %23, %cst_21 {dimension_numbers = #tpu.dot_dimension_numbers<[1], [0], [0], [1], [0, 0, 1, 1], [], []>} : vector<16x32xbf16>, vector<32x128xbf16>, vector<16x128xf32> -> vector<16x128xf32>
    %c0_22 = arith.constant 0 : index
    %c0_23 = arith.constant 0 : index
    %25 = vector.load %arg9[%c0_22, %c0_23] : memref<1x128xf32, #tpu.memory_space<vmem>>, vector<1x128xf32>
    %26 = vector.broadcast %25 : vector<1x128xf32> to vector<16x128xf32>
    %27 = arith.addf %24, %26 : vector<16x128xf32>
    %28 = arith.negf %27 : vector<16x128xf32>
    %29 = math.exp %28 : vector<16x128xf32>
    %cst_24 = arith.constant 1.000000e+00 : f32
    %30 = vector.broadcast %cst_24 : f32 to vector<16x128xf32>
    %31 = arith.addf %30, %29 : vector<16x128xf32>
    %32 = arith.divf %30, %31 : vector<16x128xf32>
    %c0_25 = arith.constant 0 : index
    %c0_26 = arith.constant 0 : index
    %33 = vector.load %arg11[%c0_25, %c0_26] : memref<16x128xf32, #tpu.memory_space<vmem>>, vector<16x128xf32>
    tpu.vector_store %arg11[%c0_25, %c0_26], %32 {strides = array<i32>} : memref<16x128xf32, #tpu.memory_space<vmem>>, vector<16x128xf32>,
    return
  }
  func.func @transform_0(%arg0: i32) -> (i32, i32) {
    %c0_i32 = arith.constant 0 : i32
    %c0_i32_0 = arith.constant 0 : i32
    return %arg0, %c0_i32 : i32, i32
  }
  func.func @transform_1(%arg0: i32) -> (i32, i32) {
    %c0_i32 = arith.constant 0 : i32
    %c0_i32_0 = arith.constant 0 : i32
    %c0_i32_1 = arith.constant 0 : i32
    return %c0_i32, %c0_i32_0 : i32, i32
  }
  func.func @transform_2(%arg0: i32) -> (i32, i32) {
    %c0_i32 = arith.constant 0 : i32
    %c0_i32_0 = arith.constant 0 : i32
    %c0_i32_1 = arith.constant 0 : i32
    return %c0_i32, %c0_i32_0 : i32, i32
  }
  func.func @transform_3(%arg0: i32) -> (i32, i32) {
    %c0_i32 = arith.constant 0 : i32
    %c0_i32_0 = arith.constant 0 : i32
    %c0_i32_1 = arith.constant 0 : i32
    return %c0_i32, %c0_i32_0 : i32, i32
  }
  func.func @transform_4(%arg0: i32) -> (i32, i32) {
    %c0_i32 = arith.constant 0 : i32
    %c0_i32_0 = arith.constant 0 : i32
    %c0_i32_1 = arith.constant 0 : i32
    return %c0_i32, %c0_i32_0 : i32, i32
  }
  func.func @transform_5(%arg0: i32) -> (i32, i32) {
    %c0_i32 = arith.constant 0 : i32
    %c0_i32_0 = arith.constant 0 : i32
    %c0_i32_1 = arith.constant 0 : i32
    return %c0_i32, %c0_i32_0 : i32, i32
  }
  func.func @transform_6(%arg0: i32) -> (i32, i32) {
    %c0_i32 = arith.constant 0 : i32
    %c0_i32_0 = arith.constant 0 : i32
    %c0_i32_1 = arith.constant 0 : i32
    return %c0_i32, %c0_i32_0 : i32, i32
  }
  func.func @transform_7(%arg0: i32) -> (i32, i32) {
    %c0_i32 = arith.constant 0 : i32
    %c0_i32_0 = arith.constant 0 : i32
    %c0_i32_1 = arith.constant 0 : i32
    return %c0_i32, %c0_i32_0 : i32, i32
  }
  func.func @transform_8(%arg0: i32) -> (i32, i32) {
    %c0_i32 = arith.constant 0 : i32
    %c0_i32_0 = arith.constant 0 : i32
    %c0_i32_1 = arith.constant 0 : i32
    return %c0_i32, %c0_i32_0 : i32, i32
  }
  func.func @transform_9(%arg0: i32) -> (i32, i32) {
    %c0_i32 = arith.constant 0 : i32
    %c0_i32_0 = arith.constant 0 : i32
    return %arg0, %c0_i32 : i32, i32
  }
  func.func @transform_10(%arg0: i32) -> (i32, i32) {
    %c0_i32 = arith.constant 0 : i32
    %c0_i32_0 = arith.constant 0 : i32
    return %arg0, %c0_i32 : i32, i32
  }
}

</mosaic_0001>

<bundles_post_ra>
// kernel: artr_heads.1
= control target key start
LH: loop header
LB: loop body
LE: loop exit
PB: predicated region body
PF: predicated region fallthrough
CT: control target
= control target key end

     0   :  { %v420_v0 = vmov 0.0   ;;  %vm421_vm0 = vmmov 0   ;;  %vm65_vm1 = vcmask 261120   ;;  %s536_s3 = inlined_call_operand.vmem [shape: bf16[32,32], index: 3, kind: input, shape index: {}]   ;;  %s537_s1 = inlined_call_operand.vmem [shape: bf16[32,128], index: 1, kind: input, shape index: {}]   ;;  %s538_s0 = inlined_call_operand.vmem [shape: bf16[16,32], index: 0, kind: input, shape index: {}]   ;;  %s539_s5 = inlined_call_operand.vmem [shape: bf16[32,32], index: 5, kind: input, shape index: {}]   ;;  %s540_s4 = inlined_call_operand.vmem [shape: f32[1,32], index: 4, kind: input, shape index: {}]   ;;  %s541_s2 = inlined_call_operand.vmem [shape: f32[1,128], index: 2, kind: input, shape index: {}]   ;;  %s542_s9 = inlined_call_operand.vmem [shape: f32[16,128], index: 9, kind: output, shape index: {0}]   ;;  %s543_s7 = inlined_call_operand.vmem [shape: bf16[32,128], index: 7, kind: input, shape index: {}]   ;;  %s544_s6 = inlined_call_operand.vmem [shape: f32[1,32], index: 6, kind: input, shape index: {}]   ;;  %s545_s8 = inlined_call_operand.vmem [shape: f32[1,128], index: 8, kind: input, shape index: {}]   ;;  %s546_s10 = inlined_call_operand.vmem [shape: f32[16,128], index: 10, kind: output, shape index: {1}]  }
   0x1   :  { %377 = vmatprep.subr.bf16.mxu1 %v420_v0  ;;  %v403_v1 = vld [vmem:[%s536_s3] sm:$0xff]   ;;  %381 = vmatprep.mubr.msk.bf16.mxu1 %vm421_vm0, %v420_v0  ;;  %v404_v2 = vld [vmem:[%s536_s3 + $0x8] sm:$0xff]  }
   0x2   :  { %369 = vmatprep.subr.bf16.mxu0 %v420_v0  ;;  %373 = vmatprep.mubr.msk.bf16.mxu0 %vm421_vm0, %v420_v0  ;;  %v406_v3 = vld [vmem:[%s537_s1] sm:$0xff]   ;;  %v407_v5 = vld [vmem:[%s537_s1 + $0x8] sm:$0xff]  }
   0x3   :  { %378 = vmatpush3.bf16.msra.mxu1 %v403_v1  ;;  %v405_v4 = vld [vmem:[%s538_s0] sm:$0xff]   ;;  %370 = vmatpush3.bf16.msra.mxu0 %v406_v3  ;;  %v409_v7 = vld [vmem:[%s539_s5 + $0x8] sm:$0xff]  }
   0x4   :  { %379 = vmatprep.subr.bf16.mxu1 %v420_v0  ;;  %371 = vmatprep.subr.bf16.mxu0 %v420_v0  ;;  %v408_v6 = vld [vmem:[%s539_s5] sm:$0xff]   ;;  %v411_v26 = vld [vmem:[%s543_s7 + $0x8] sm:$0xff]  }
   0x5   :  { %v343_v8 = vld [vmem:[%s540_s4] ss:$0 sm:$0xff] }
   0x6   :  { %v338_v12 = vld [vmem:[%s541_s2] ss:$0 sm:$0xff] }
   0x7   :  { %380 = vmatpush3.bf16.msra.mxu1 %v404_v2  ;;  %372 = vmatpush3.bf16.msra.mxu0 %v407_v5  ;;  %v410_v25 = vld [vmem:[%s543_s7] sm:$0xff]  }
   0x8   :  { %393 = vmatprep.subr.bf16.mxu1 %v420_v0  ;;  %385 = vmatprep.subr.bf16.mxu0 %v420_v0  ;;  %v347_v27 = vld [vmem:[%s544_s6] ss:$0 sm:$0xff] }
   0x9   :  { %v351_v37 = vld [vmem:[%s545_s8] ss:$0 sm:$0xff] }
   0xa   :  { %382 = vmatmul.mubr.msk.bf16.vlgmr.msra.gmra.mrb[0].mxu1 %vm65_vm1, %v405_v4  ;;  %374 = vmatmul.mubr.msk.bf16.vlgmr.msra.gmra.mrb[0].mxu0 %vm65_vm1, %v405_v4 }
   0xb   :  { %397 = vmatprep.mubr.msk.bf16.mxu1 %vm421_vm0, %v420_v0  ;;  %389 = vmatprep.mubr.msk.bf16.mxu0 %vm421_vm0, %v420_v0 }
   0xc   :  { %386 = vmatpush3.bf16.msra.mxu0 %v408_v6  ;;  %394 = vmatpush3.bf16.msra.mxu1 %v410_v25 }
   0xd   :  { %387 = vmatprep.subr.bf16.mxu0 %v420_v0  ;;  %395 = vmatprep.subr.bf16.mxu1 %v420_v0 }
  0x10   :  { %388 = vmatpush3.bf16.msra.mxu0 %v409_v7  ;;  %396 = vmatpush3.bf16.msra.mxu1 %v411_v26 }
  0xdd   :  { %v169_v9 = vpop.f32.mrb[0].mxu1  ;;  %v103_v16 = vpop.f32.mrb[0].mxu0 }
  0xde   :  { %v170_v10 = vadd.f32 %v343_v8, %v169_v9  ;;  %v383_v11 = vpop.f32.mrb[1].mxu1  ;;  %v104_v17 = vadd.f32 %v338_v12, %v103_v16  ;;  %v375_v18 = vpop.f32.mrb[1].mxu0 }
  0xdf   :  { %v172_v13 = vpop.f32.mrb[2].mxu1  ;;  %v106_v21 = vpop.f32.mrb[2].mxu0 }
  0xe0   :  { %v173_v14 = vadd.f32 %v343_v8, %v172_v13  ;;  %v384_v15 = vpop.f32.mrb[3].mxu1  ;;  %v176_v19 = vmax.f32 %v170_v10, 0.0  ;;  %110 = vst [vmem:[%s542_s9] sm:$0xff] %v104_v17  ;;  %v107_v22 = vadd.f32 %v338_v12, %v106_v21  ;;  %v376_v23 = vpop.f32.mrb[3].mxu0 }
  0xe2   :  { %v177_v20 = vmax.f32 %v173_v14, 0.0  ;;  %111 = vst [vmem:[%s542_s9 + $0x8] sm:$0xff] %v107_v22 }
  0xe4   :  { %v178_v24 = vpack.c.bf16 %v177_v20, %v176_v19 }
  0xe6   :  { %390 = vmatmul.mubr.msk.bf16.vlgmr.msra.gmra.mrb[4].mxu0 %vm65_vm1, %v178_v24 }
 0x1b9   :  { %v239_v28 = vpop.f32.mrb[4].mxu0 }
 0x1ba   :  { %v240_v29 = vadd.f32 %v347_v27, %v239_v28  ;;  %v391_v30 = vpop.f32.mrb[5].mxu0 }
 0x1bb   :  { %v242_v31 = vpop.f32.mrb[6].mxu0 }
 0x1bc   :  { %v243_v32 = vadd.f32 %v347_v27, %v242_v31  ;;  %v392_v33 = vpop.f32.mrb[7].mxu0  ;;  %v246_v34 = vmax.f32 %v240_v29, 0.0 }
 0x1be   :  { %v247_v35 = vmax.f32 %v243_v32, 0.0 }
 0x1c0   :  { %v248_v36 = vpack.c.bf16 %v247_v35, %v246_v34 }
 0x1c2   :  { %398 = vmatmul.mubr.msk.bf16.vlgmr.msra.gmra.mrb[4].mxu1 %vm65_vm1, %v248_v36 }
 0x295   :  { %v309_v38 = vpop.f32.mrb[4].mxu1 }
 0x296   :  { %v310_v39 = vadd.f32 %v351_v37, %v309_v38  ;;  %v399_v40 = vpop.f32.mrb[5].mxu1 }
 0x297   :  { %v312_v41 = vpop.f32.mrb[6].mxu1 }
 0x298   :  { %v355_v42 = vmul.f32 -1.442695, %v310_v39  ;;  %v313_v43 = vadd.f32 %v351_v37, %v312_v41  ;;  %v400_v44 = vpop.f32.mrb[7].mxu1 }
 0x29a   :  { %412 = vpow2.f32 %v355_v42  ;;  %v356_v45 = vmul.f32 -1.442695, %v313_v43 }
 0x29c   :  { %414 = vpow2.f32 %v356_v45 }
 0x2a4   :  { %v413_v46 = vpop.eup %412 }
 0x2a5   :  { %v322_v47 = vadd.f32 1.0, %v413_v46 }
 0x2a6   :  { %v415_v48 = vpop.eup %414 }
 0x2a7   :  { %416 = vrcp.f32 %v322_v47  ;;  %v323_v49 = vadd.f32 1.0, %v415_v48 }
 0x2a9   :  { %418 = vrcp.f32 %v323_v49 }
 0x2b1   :  { %v417_v50 = vpop.eup %416 }
 0x2b2   :  { %328 = vst [vmem:[%s546_s10] sm:$0xff] %v417_v50 }
 0x2b3   :  { %v419_v51 = vpop.eup %418 }
 0x2b4   :  { %329 = vst [vmem:[%s546_s10 + $0x8] sm:$0xff] %v419_v51 }

</bundles_post_ra>
